<compile_context>
chip_gen: v6e
topology: v6e:2x2x1
jax: 0.10.0
libtpu: 0.0.40
codegen_flags: <defaults>
</compile_context>

<pallas_src>
import functools

import jax
import jax.numpy as jnp
from jax.experimental import pallas as pl
from jax.experimental.pallas import tpu as pltpu


def mlp_kernel(x_ref, w0_ref, b0_ref, w1_ref, b1_ref,
               w2_ref, b2_ref, w3_ref, b3_ref, o_ref):
    """Fused scaler(+fold) -> Linear/ReLU x3 -> Linear.  Dropout == identity."""
    cdt = w1_ref.dtype  # compute dtype of the middle/last matmuls (f32 or bf16)

    # Layer 0 (RobustScaler folded into w0/b0; kept f32): x is read as f32 straight
    # from HBM, any narrowing happens in-register below.
    h = jnp.dot(x_ref[...], w0_ref[...], preferred_element_type=jnp.float32) + b0_ref[...]
    h = jnp.maximum(h, 0.0).astype(cdt)

    # hidden_0: Linear + ReLU
    h = jnp.dot(h, w1_ref[...], preferred_element_type=jnp.float32) + b1_ref[...]
    h = jnp.maximum(h, 0.0).astype(cdt)

    # hidden_1: Linear + ReLU
    h = jnp.dot(h, w2_ref[...], preferred_element_type=jnp.float32) + b2_ref[...]
    h = jnp.maximum(h, 0.0).astype(cdt)

    # output: Linear, written at its true (un-padded) width.
    o_ref[...] = (jnp.dot(h, w3_ref[...], preferred_element_type=jnp.float32)
                  + b3_ref[...]).astype(o_ref.dtype)


def prepare_params(center, scale, weights, biases, compute_dtype=jnp.bfloat16):
    """One-time (model-load-time) parameter prep — keep this OUT of the per-call path.

    - Folds RobustScaler (x - center) / scale into layer 0:
        ((x - c)/s) @ W0t + b0  ==  x @ (W0t * (1/s)[:,None]) + (b0 - (c/s) @ W0t)
      scale_ == 0 (constant feature) is replaced by 1.0, matching sklearn.
    - Pre-transposes PyTorch-layout (out, in) weights to (in, out).
    - Layer-0 weight/bias stay f32 (tiny) so the folded 1/scale does not amplify
      bf16 rounding; middle/output weights are cast to `compute_dtype` for the MXU.
      Biases stay f32 (accumulation is always f32).
    """
    center = jnp.asarray(center, jnp.float32)
    scale = jnp.asarray(scale, jnp.float32)
    scale = jnp.where(scale == 0.0, 1.0, scale)   # sklearn RobustScaler zero-scale guard
    inv_scale = 1.0 / scale

    wts = [jnp.asarray(w, jnp.float32).T for w in weights]            # (in, out)
    bss = [jnp.asarray(b, jnp.float32).reshape(1, -1) for b in biases]

    w0 = wts[0] * inv_scale[:, None]
    b0 = bss[0] - (center * inv_scale) @ wts[0]

    cdt = jnp.dtype(compute_dtype)
    return (w0, b0,
            wts[1].astype(cdt), bss[1],
            wts[2].astype(cdt), bss[2],
            wts[3].astype(cdt), bss[3])


@functools.partial(jax.jit, static_argnames=("tm",))
def mlp_forward(x, params, *, tm=4096):
    """x: (B, input_size) float32; params: output of prepare_params()."""
    assert tm % 8 == 0, "tm must be a sublane multiple"
    B, F = x.shape
    out_size = params[-1].shape[-1]

    # Batch tiling (no jnp.pad copy of x in any case):
    #  * B <= tm : one block equal to the full batch dim (block == full dim is legal).
    #  * B  > tm : tm-row tiles; Pallas clamps/masks the ragged last block itself.
    #    Keep tm modest enough that large B yields >=2 tiles so ("parallel",) can
    #    shard them across v7x's two TensorCores.
    tm_eff = B if B <= tm else tm
    grid = (pl.cdiv(B, tm_eff),)

    x_spec = pl.BlockSpec((tm_eff, F), lambda i: (i, 0))
    out_spec = pl.BlockSpec((tm_eff, out_size), lambda i: (i, 0))
    # Weights/biases: full-array blocks with a constant index_map -> fetched once and
    # resident in VMEM across all batch tiles.  (Left on the default pipeline buffers;
    # the params total only a few KB so an explicit Buffered(1) override buys nothing.)
    param_specs = [pl.BlockSpec(p.shape, lambda i: (0, 0)) for p in params]

    # VMEM: 2 * (x tile + out tile) + params is far below the default scoped limit on
    # v5e/v6e/v7x, so no vmem_limit_bytes override is needed.
    return pl.pallas_call(
        mlp_kernel,
        out_shape=jax.ShapeDtypeStruct((B, out_size), jnp.float32),
        grid=grid,
        in_specs=[x_spec] + param_specs,
        out_specs=out_spec,
        compiler_params=pltpu.CompilerParams(
            dimension_semantics=("parallel",),  # megacore split on v7x; no-op elsewhere
        ),
    )(x, *params)


def mlp_reference(x, center, scale, weights, biases):
    s = jnp.where(scale == 0.0, 1.0, scale)
    h = (x - center.reshape(1, -1)) / s.reshape(1, -1)
    for i, (w, b) in enumerate(zip(weights, biases)):
        h = h @ w.T + b
        if i < len(weights) - 1:
            h = jnp.maximum(h, 0.0)
    return h


if __name__ == "__main__":
    batch = 8
    input_size = 16
    hidden_size = 32
    output_size = 4
    # n_layers=4 => linear layers: in->h, h->h, h->h, h->out

    key = jax.random.PRNGKey(0)
    keys = jax.random.split(key, 16)

    x = jax.random.normal(keys[0], (batch, input_size), dtype=jnp.float32)

    # Deterministic "fitted" RobustScaler stats (center_, scale_)
    center = jax.random.normal(keys[1], (input_size,), dtype=jnp.float32) * 0.5
    scale = jax.random.uniform(keys[2], (input_size,), jnp.float32,
                               minval=0.5, maxval=2.0)

    # Deterministic MLP parameters (PyTorch Linear layout: W (out, in), b (out,))
    layer_dims = [(input_size, hidden_size),
                  (hidden_size, hidden_size),
                  (hidden_size, hidden_size),
                  (hidden_size, output_size)]
    weights, biases = [], []
    for i, (fan_in, fan_out) in enumerate(layer_dims):
        wkey, bkey = jax.random.split(keys[3 + i])
        bound = 1.0 / (fan_in ** 0.5)
        weights.append(jax.random.uniform(wkey, (fan_out, fan_in), jnp.float32,
                                          minval=-bound, maxval=bound))
        biases.append(jax.random.uniform(bkey, (fan_out,), jnp.float32,
                                         minval=-bound, maxval=bound))

    ref = mlp_reference(x, center, scale, weights, biases)

    # f32-weight path.  Tolerance accounts for TPU default matmul precision being
    # bf16-grade for f32 operands (both kernel and reference round similarly).
    params_f32 = prepare_params(center, scale, weights, biases, compute_dtype=jnp.float32)
    out_f32 = jax.block_until_ready(mlp_forward(x, params_f32))
    assert out_f32.shape == (batch, output_size)
    assert jnp.allclose(out_f32, ref, atol=5e-2, rtol=5e-2), "f32 mismatch vs reference"

    # Fast bf16-MXU path (middle/output layers bf16, f32 accumulation).
    params_bf16 = prepare_params(center, scale, weights, biases, compute_dtype=jnp.bfloat16)
    out_bf16 = jax.block_until_ready(mlp_forward(x, params_bf16))
    assert out_bf16.shape == (batch, output_size)
    assert jnp.allclose(out_bf16, ref, atol=1e-1, rtol=1e-1), "bf16 mismatch vs reference"

    print("KERNEL_OK")
</pallas_src>

<mosaic_0001>
module attributes {stable_mosaic.version = 11 : i64} {
  func.func @mlp_kernel(%arg0: i32, %arg1: memref<8x16xf32, #tpu.memory_space<vmem>>, %arg2: memref<16x32xf32, #tpu.memory_space<vmem>>, %arg3: memref<1x32xf32, #tpu.memory_space<vmem>>, %arg4: memref<32x32xf32, #tpu.memory_space<vmem>>, %arg5: memref<1x32xf32, #tpu.memory_space<vmem>>, %arg6: memref<32x32xf32, #tpu.memory_space<vmem>>, %arg7: memref<1x32xf32, #tpu.memory_space<vmem>>, %arg8: memref<32x4xf32, #tpu.memory_space<vmem>>, %arg9: memref<1x4xf32, #tpu.memory_space<vmem>>, %arg10: memref<8x4xf32, #tpu.memory_space<vmem>>) attributes {dimension_semantics = [#tpu.dimension_semantics<parallel>], iteration_bounds = array<i64: 1>, scalar_prefetch = 0 : i64, scratch_operands = 0 : i64, tpu.core_type = #tpu.core_type<tc>, window_params = [{transform_indices = @transform_0, window_bounds = array<i64: 8, 16>}, {pipeline_mode = #tpu.pipeline_mode<synchronous>, transform_indices = @transform_1, window_bounds = array<i64: 16, 32>}, {pipeline_mode = #tpu.pipeline_mode<synchronous>, transform_indices = @transform_2, window_bounds = array<i64: 1, 32>}, {pipeline_mode = #tpu.pipeline_mode<synchronous>, transform_indices = @transform_3, window_bounds = array<i64: 32, 32>}, {pipeline_mode = #tpu.pipeline_mode<synchronous>, transform_indices = @transform_4, window_bounds = array<i64: 1, 32>}, {pipeline_mode = #tpu.pipeline_mode<synchronous>, transform_indices = @transform_5, window_bounds = array<i64: 32, 32>}, {pipeline_mode = #tpu.pipeline_mode<synchronous>, transform_indices = @transform_6, window_bounds = array<i64: 1, 32>}, {pipeline_mode = #tpu.pipeline_mode<synchronous>, transform_indices = @transform_7, window_bounds = array<i64: 32, 4>}, {pipeline_mode = #tpu.pipeline_mode<synchronous>, transform_indices = @transform_8, window_bounds = array<i64: 1, 4>}, {transform_indices = @transform_9, window_bounds = array<i64: 8, 4>}]} {
    %c0 = arith.constant 0 : index
    %c0_0 = arith.constant 0 : index
    %0 = vector.load %arg1[%c0, %c0_0] : memref<8x16xf32, #tpu.memory_space<vmem>>, vector<8x16xf32>
    %c0_1 = arith.constant 0 : index
    %c0_2 = arith.constant 0 : index
    %1 = vector.load %arg2[%c0_1, %c0_2] : memref<16x32xf32, #tpu.memory_space<vmem>>, vector<16x32xf32>
    %cst = arith.constant dense<0.000000e+00> : vector<8x32xf32>
    %2 = tpu.matmul %0, %1, %cst {dimension_numbers = #tpu.dot_dimension_numbers<[1], [0], [0], [1], [0, 0, 1, 1], [], []>} : vector<8x16xf32>, vector<16x32xf32>, vector<8x32xf32> -> vector<8x32xf32>
    %c0_3 = arith.constant 0 : index
    %c0_4 = arith.constant 0 : index
    %3 = vector.load %arg3[%c0_3, %c0_4] : memref<1x32xf32, #tpu.memory_space<vmem>>, vector<1x32xf32>
    %4 = vector.broadcast %3 : vector<1x32xf32> to vector<8x32xf32>
    %5 = arith.addf %2, %4 : vector<8x32xf32>
    %cst_5 = arith.constant 0.000000e+00 : f32
    %6 = vector.broadcast %cst_5 : f32 to vector<8x32xf32>
    %7 = arith.maximumf %5, %6 : vector<8x32xf32>
    %c0_6 = arith.constant 0 : index
    %c0_7 = arith.constant 0 : index
    %8 = vector.load %arg4[%c0_6, %c0_7] : memref<32x32xf32, #tpu.memory_space<vmem>>, vector<32x32xf32>
    %cst_8 = arith.constant dense<0.000000e+00> : vector<8x32xf32>
    %9 = tpu.matmul %7, %8, %cst_8 {dimension_numbers = #tpu.dot_dimension_numbers<[1], [0], [0], [1], [0, 0, 1, 1], [], []>} : vector<8x32xf32>, vector<32x32xf32>, vector<8x32xf32> -> vector<8x32xf32>
    %c0_9 = arith.constant 0 : index
    %c0_10 = arith.constant 0 : index
    %10 = vector.load %arg5[%c0_9, %c0_10] : memref<1x32xf32, #tpu.memory_space<vmem>>, vector<1x32xf32>
    %11 = vector.broadcast %10 : vector<1x32xf32> to vector<8x32xf32>
    %12 = arith.addf %9, %11 : vector<8x32xf32>
    %cst_11 = arith.constant 0.000000e+00 : f32
    %13 = vector.broadcast %cst_11 : f32 to vector<8x32xf32>
    %14 = arith.maximumf %12, %13 : vector<8x32xf32>
    %c0_12 = arith.constant 0 : index
    %c0_13 = arith.constant 0 : index
    %15 = vector.load %arg6[%c0_12, %c0_13] : memref<32x32xf32, #tpu.memory_space<vmem>>, vector<32x32xf32>
    %cst_14 = arith.constant dense<0.000000e+00> : vector<8x32xf32>
    %16 = tpu.matmul %14, %15, %cst_14 {dimension_numbers = #tpu.dot_dimension_numbers<[1], [0], [0], [1], [0, 0, 1, 1], [], []>} : vector<8x32xf32>, vector<32x32xf32>, vector<8x32xf32> -> vector<8x32xf32>
    %c0_15 = arith.constant 0 : index
    %c0_16 = arith.constant 0 : index
    %17 = vector.load %arg7[%c0_15, %c0_16] : memref<1x32xf32, #tpu.memory_space<vmem>>, vector<1x32xf32>
    %18 = vector.broadcast %17 : vector<1x32xf32> to vector<8x32xf32>
    %19 = arith.addf %16, %18 : vector<8x32xf32>
    %cst_17 = arith.constant 0.000000e+00 : f32
    %20 = vector.broadcast %cst_17 : f32 to vector<8x32xf32>
    %21 = arith.maximumf %19, %20 : vector<8x32xf32>
    %c0_18 = arith.constant 0 : index
    %c0_19 = arith.constant 0 : index
    %22 = vector.load %arg8[%c0_18, %c0_19] : memref<32x4xf32, #tpu.memory_space<vmem>>, vector<32x4xf32>
    %cst_20 = arith.constant dense<0.000000e+00> : vector<8x4xf32>
    %23 = tpu.matmul %21, %22, %cst_20 {dimension_numbers = #tpu.dot_dimension_numbers<[1], [0], [0], [1], [0, 0, 1, 1], [], []>} : vector<8x32xf32>, vector<32x4xf32>, vector<8x4xf32> -> vector<8x4xf32>
    %c0_21 = arith.constant 0 : index
    %c0_22 = arith.constant 0 : index
    %24 = vector.load %arg9[%c0_21, %c0_22] : memref<1x4xf32, #tpu.memory_space<vmem>>, vector<1x4xf32>
    %25 = vector.broadcast %24 : vector<1x4xf32> to vector<8x4xf32>
    %26 = arith.addf %23, %25 : vector<8x4xf32>
    %c0_23 = arith.constant 0 : index
    %c0_24 = arith.constant 0 : index
    %27 = vector.load %arg10[%c0_23, %c0_24] : memref<8x4xf32, #tpu.memory_space<vmem>>, vector<8x4xf32>
    tpu.vector_store %arg10[%c0_23, %c0_24], %26 {strides = array<i32>} : memref<8x4xf32, #tpu.memory_space<vmem>>, vector<8x4xf32>,
    return
  }
  func.func @transform_0(%arg0: i32) -> (i32, i32) {
    %c0_i32 = arith.constant 0 : i32
    %c0_i32_0 = arith.constant 0 : i32
    return %arg0, %c0_i32 : i32, i32
  }
  func.func @transform_1(%arg0: i32) -> (i32, i32) {
    %c0_i32 = arith.constant 0 : i32
    %c0_i32_0 = arith.constant 0 : i32
    %c0_i32_1 = arith.constant 0 : i32
    return %c0_i32, %c0_i32_0 : i32, i32
  }
  func.func @transform_2(%arg0: i32) -> (i32, i32) {
    %c0_i32 = arith.constant 0 : i32
    %c0_i32_0 = arith.constant 0 : i32
    %c0_i32_1 = arith.constant 0 : i32
    return %c0_i32, %c0_i32_0 : i32, i32
  }
  func.func @transform_3(%arg0: i32) -> (i32, i32) {
    %c0_i32 = arith.constant 0 : i32
    %c0_i32_0 = arith.constant 0 : i32
    %c0_i32_1 = arith.constant 0 : i32
    return %c0_i32, %c0_i32_0 : i32, i32
  }
  func.func @transform_4(%arg0: i32) -> (i32, i32) {
    %c0_i32 = arith.constant 0 : i32
    %c0_i32_0 = arith.constant 0 : i32
    %c0_i32_1 = arith.constant 0 : i32
    return %c0_i32, %c0_i32_0 : i32, i32
  }
  func.func @transform_5(%arg0: i32) -> (i32, i32) {
    %c0_i32 = arith.constant 0 : i32
    %c0_i32_0 = arith.constant 0 : i32
    %c0_i32_1 = arith.constant 0 : i32
    return %c0_i32, %c0_i32_0 : i32, i32
  }
  func.func @transform_6(%arg0: i32) -> (i32, i32) {
    %c0_i32 = arith.constant 0 : i32
    %c0_i32_0 = arith.constant 0 : i32
    %c0_i32_1 = arith.constant 0 : i32
    return %c0_i32, %c0_i32_0 : i32, i32
  }
  func.func @transform_7(%arg0: i32) -> (i32, i32) {
    %c0_i32 = arith.constant 0 : i32
    %c0_i32_0 = arith.constant 0 : i32
    %c0_i32_1 = arith.constant 0 : i32
    return %c0_i32, %c0_i32_0 : i32, i32
  }
  func.func @transform_8(%arg0: i32) -> (i32, i32) {
    %c0_i32 = arith.constant 0 : i32
    %c0_i32_0 = arith.constant 0 : i32
    %c0_i32_1 = arith.constant 0 : i32
    return %c0_i32, %c0_i32_0 : i32, i32
  }
  func.func @transform_9(%arg0: i32) -> (i32, i32) {
    %c0_i32 = arith.constant 0 : i32
    %c0_i32_0 = arith.constant 0 : i32
    return %arg0, %c0_i32 : i32, i32
  }
}

</mosaic_0001>

<bundles_post_ra>
// kernel: mlp_forward.1
= control target key start
LH: loop header
LB: loop body
LE: loop exit
PB: predicated region body
PF: predicated region fallthrough
CT: control target
= control target key end

     0   :  { %14 = vsyncpa [#allocation3], 0  ;;  %s668_s0 = inlined_call_operand.vmem [shape: f32[8,16], index: 0, kind: input, shape index: {}]   ;;  %s669_s1 = inlined_call_operand.hbm [shape: f32[16,32], index: 1, kind: input, shape index: {}]   ;;  %s670_s2 = inlined_call_operand.vmem [shape: f32[1,32], index: 2, kind: input, shape index: {}]   ;;  %s671_s3 = inlined_call_operand.vmem [shape: f32[32,32], index: 3, kind: input, shape index: {}]   ;;  %s672_s4 = inlined_call_operand.hbm [shape: f32[1,32], index: 4, kind: input, shape index: {}]   ;;  %s673_s5 = inlined_call_operand.hbm [shape: f32[32,32], index: 5, kind: input, shape index: {}]   ;;  %s674_s6 = inlined_call_operand.vmem [shape: f32[1,32], index: 6, kind: input, shape index: {}]   ;;  %s675_s7 = inlined_call_operand.vmem [shape: f32[32,4], index: 7, kind: input, shape index: {}]   ;;  %s676_s8 = inlined_call_operand.vmem [shape: f32[1,4], index: 8, kind: input, shape index: {}]   ;;  %s677_s9 = inlined_call_operand.vmem [shape: f32[8,4], index: 9, kind: output, shape index: {}]  }
   0x1   :  { %15 = vsyncpa [#allocation5], 0  ;;  %s556_s30 = smov [#allocation4]   ;;  %s557_s11 = smov [#allocation2]  }
   0x2   :  { %s40_s10 = sshll.u32 %s556_s30, 4  ;;  %s23_s12 = sshll.u32 %s557_s11, 4  ;;  %s41_s10 = int_to_ptr.vmem [resolvable:$true] %s40_s10  ;;  %s24_s12 = int_to_ptr.vmem [resolvable:$true] %s23_s12 }
   0x3   :  { %s500_s13 = scalar_lea.vmem %s41_s10, 16  ;;  %s504_s14 = scalar_lea.vmem %s41_s10, 32 }
   0x4   :  { %p501_p0 = scmp.ne.s32.totalorder %s41_s10, %s500_s13  ;;  %p505_p1 = scmp.lt.s32.totalorder %s41_s10, %s41_s10 }
   0x5   :  { %p506_p2 = scmp.lt.s32.totalorder %s504_s14, %s500_s13 }
   0x7   :  { %p507_p3 = por %p506_p2, %p505_p1 }
   0x9   :  { %p508_p4 = pnand %p507_p3, %p501_p0 }
   0xb   :  { %511 = shalt.err (!%p508_p4)
}
   0xc   :  { %43 = dma.hbm_to_vmem [thread:$0]  %s672_s4, 16, %s41_s10, [#allocation5]  }
   0xd   :  { %s520_s17 = scalar_lea.vmem %s24_s12, 256  ;;  %p525_p6 = scmp.lt.s32.totalorder %s24_s12, %s24_s12 }
   0xe   :  { %p521_p5 = scmp.ne.s32.totalorder %s24_s12, %s520_s17  ;;  %p526_p7 = scmp.lt.s32.totalorder %s520_s17, %s520_s17 }
  0x10   :  { %p527_p8 = por %p526_p7, %p525_p6 }
  0x12   :  { %p528_p9 = pnand %p527_p8, %p521_p5 }
  0x14   :  { %531 = shalt.err (!%p528_p9)
}
  0x15   :  { %s558_s18 = smov 128   ;;  %s559_s19 = smov 8  }
  0x16   :  { %29 = dma.hbm_to_vmem [thread:$0]  %s669_s1, 256, %s24_s12, [#allocation3], %s558_s18, %s558_s18, %s559_s19  }
  0x17   :  { %s560_s22 = smov [#allocation6]  }
  0x18   :  { %s49_s23 = sshll.u32 %s560_s22, 4  ;;  %s50_s23 = int_to_ptr.vmem [resolvable:$true] %s49_s23 }
  0x19   :  { %s540_s24 = scalar_lea.vmem %s50_s23, 512  ;;  %p545_p11 = scmp.lt.s32.totalorder %s50_s23, %s50_s23 }
  0x1a   :  { %p541_p10 = scmp.ne.s32.totalorder %s50_s23, %s540_s24  ;;  %p546_p12 = scmp.lt.s32.totalorder %s540_s24, %s540_s24 }
  0x1c   :  { %p547_p13 = por %p546_p12, %p545_p11 }
  0x1e   :  { %p548_p0 = pnand %p547_p13, %p541_p10 }
  0x20   :  { %551 = shalt.err (!%p548_p0)
}
  0x21   :  { %55 = dma.hbm_to_vmem [thread:$0]  %s673_s5, 512, %s50_s23, [#allocation5], %s558_s18, %s558_s18, %s559_s19  }
  0x22   :  { %552 = dma.done.wait [#allocation3], 256  }
  0x23   :  { %553 = vsyncadd [#allocation3], 4294967040 }
  0x24   :  { %554 = dma.done.wait [#allocation5], 528  }
  0x25   :  { %555 = vsyncadd [#allocation5], 4294966768  ;;  %v561_v0 = vmov 0.0   ;;  %vm562_vm0 = vmmov 0   ;;  %v73_v1 = vld [vmem:[#allocation2 + $0x8] sm:$0xff]  ;;  %v72_v2 = vld [vmem:[#allocation2] sm:$0xff] }
  0x26   :  { %445 = vmatprep.subr.mxu0 %v561_v0  ;;  %449 = vmatprep.mubr.msk.f32.mxu0 %vm562_vm0, %v561_v0  ;;  %v71_v3 = vld [vmem:[%s668_s0] sm:$0xff]  ;;  %vm81_vm1 = vcmask 130048   ;;  %v159_v4 = vld [vmem:[%s671_s3 + $0x18] sm:$0xff]  ;;  %v158_v5 = vld [vmem:[%s671_s3 + $0x10] sm:$0xff]  ;;  %vm167_vm2 = vcmask 261120   ;;  %vm411_vm3 = vcmask 31744  }
  0x27   :  { %452 = vmatprep.subr.mxu1 %v561_v0  ;;  %460 = vmatprep.mubr.msk.f32.mxu1 %vm562_vm0, %v561_v0  ;;  %v157_v6 = vld [vmem:[%s671_s3 + $0x8] sm:$0xff]  ;;  %v156_v7 = vld [vmem:[%s671_s3] sm:$0xff]  ;;  %v242_v16 = vld [vmem:[#allocation6] sm:$0xff] }
  0x28   :  { %446 = vmatpush3.msra.mxu0 %v73_v1  ;;  %453 = vmatpush3.msra.mxu1 %v159_v4  ;;  %v245_v8 = vld [vmem:[#allocation6 + $0x18] sm:$0xff]  ;;  %v419_v9 = vld [vmem:[%s670_s2] ss:$0 sm:$0xff]  ;;  %v244_v14 = vld [vmem:[#allocation6 + $0x10] sm:$0xff] }
  0x29   :  { %447 = vmatprep.subr.mxu0 %v561_v0  ;;  %454 = vmatprep.subr.mxu1 %v561_v0  ;;  %v243_v15 = vld [vmem:[#allocation6 + $0x8] sm:$0xff]  ;;  %v421_v18 = vld [vmem:[#allocation4] ss:$0 sm:$0xff]  ;;  %v328_v24 = vld [vmem:[%s675_s7 + $0x8] sm:$0xff] }
  0x2a   :  { %448 = vmatpush3.msra.mxu0 %v72_v2  ;;  %455 = vmatpush3.msra.mxu1 %v158_v5  ;;  %v330_v17 = vld [vmem:[%s675_s7 + $0x18] sm:$0xff]  ;;  %v329_v23 = vld [vmem:[%s675_s7 + $0x10] sm:$0xff]  ;;  %v327_v25 = vld [vmem:[%s675_s7] sm:$0xff] }
  0x2b   :  { %450 = vmatmul.mubr.msk.f32.vlgmr.msra.gmra.mxu0 %vm81_vm1, %v71_v3  ;;  %463 = vmatprep.subr.mxu0 %v561_v0  ;;  %v423_v26 = vld [vmem:[%s674_s6] ss:$0 sm:$0xff] }
  0x2c   :  { %471 = vmatprep.mubr.msk.f32.mxu0 %vm562_vm0, %v561_v0  ;;  %456 = vmatprep.subr.mxu1 %v561_v0  ;;  %v425_v31 = vld [vmem:[%s676_s8] ss:$0 sm:$0xff] }
  0x2d   :  { %457 = vmatpush3.msra.mxu1 %v157_v6  ;;  %464 = vmatpush3.msra.mxu0 %v245_v8 }
  0x2e   :  { %458 = vmatprep.subr.mxu1 %v561_v0  ;;  %465 = vmatprep.subr.mxu0 %v561_v0 }
  0x2f   :  { %459 = vmatpush3.msra.mxu1 %v156_v7  ;;  %466 = vmatpush3.msra.mxu0 %v244_v14 }
  0x30   :  { %474 = vmatprep.subr.mxu1 %v561_v0  ;;  %467 = vmatprep.subr.mxu0 %v561_v0 }
  0x31   :  { %468 = vmatpush3.msra.mxu0 %v243_v15 }
  0x32   :  { %469 = vmatprep.subr.mxu0 %v561_v0 }
  0x33   :  { %470 = vmatpush3.msra.mxu0 %v242_v16 }
  0xeb   :  { %v151_v10 = vpop.f32.mrf.mxu0 }
  0xec   :  { %v152_v11 = vadd.f32 %v419_v9, %v151_v10 }
  0xed   :  { %v451_v12 = vpop.f32.mrf.mxu0 }
  0xee   :  { %v155_v13 = vmax.f32 %v152_v11, 0.0 }
  0xf0   :  { %461 = vmatmul.mubr.msk.f32.vlgmr.msra.gmra.mxu1 %vm167_vm2, %v155_v13 }
  0xf1   :  { %482 = vmatprep.mubr.msk.f32.mxu1 %vm562_vm0, %v561_v0  ;;  %475 = vmatpush3.msra.mxu1 %v330_v17 }
  0xf2   :  { %476 = vmatprep.subr.mxu1 %v561_v0 }
  0xf3   :  { %477 = vmatpush3.msra.mxu1 %v329_v23 }
  0xf4   :  { %478 = vmatprep.subr.mxu1 %v561_v0 }
  0xf5   :  { %479 = vmatpush3.msra.mxu1 %v328_v24 }
  0xf6   :  { %480 = vmatprep.subr.mxu1 %v561_v0 }
  0xf7   :  { %481 = vmatpush3.msra.mxu1 %v327_v25 }
 0x1b0   :  { %v237_v19 = vpop.f32.mrf.mxu1 }
 0x1b1   :  { %v238_v20 = vadd.f32 %v421_v18, %v237_v19 }
 0x1b2   :  { %v462_v21 = vpop.f32.mrf.mxu1 }
 0x1b3   :  { %v241_v22 = vmax.f32 %v238_v20, 0.0 }
 0x1b5   :  { %472 = vmatmul.mubr.msk.f32.vlgmr.msra.gmra.mxu0 %vm167_vm2, %v241_v22 }
 0x275   :  { %v322_v27 = vpop.f32.mrf.mxu0 }
 0x276   :  { %v323_v28 = vadd.f32 %v423_v26, %v322_v27 }
 0x277   :  { %v473_v29 = vpop.f32.mrf.mxu0 }
 0x278   :  { %v326_v30 = vmax.f32 %v323_v28, 0.0 }
 0x27a   :  { %483 = vmatmul.mubr.msk.f32.vlgmr.msra.gmra.mxu1 %vm167_vm2, %v326_v30 }
 0x33a   :  { %v407_v32 = vpop.f32.mrf.mxu1 }
 0x33b   :  { %v408_v33 = vadd.f32 %v425_v31, %v407_v32 }
 0x33c   :  { %v484_v34 = vpop.f32.mrf.mxu1 }
 0x33d   :  { %412 = vst.msk [vmem:[%s677_s9] sm:$0xff] %vm411_vm3, %v408_v33 }
 0x33e   :  { %417 = vsyncpa [#allocation3], 1 }
 0x33f   :  { %418 = vsyncpa [#allocation5], 1 }

</bundles_post_ra>
